<compile_context>
chip_gen: v7x
topology: tpu7x:2x2x1
jax: 0.10.0
libtpu: 0.0.40
codegen_flags: <defaults>
</compile_context>

<pallas_src>
import functools

import jax
import jax.numpy as jnp
from jax import lax
from jax.experimental import pallas as pl
from jax.experimental.pallas import tpu as pltpu

# Original (PyTorch) hidden sizes and their lane-padded (multiple-of-128) versions.
H1, H2, H3 = 192, 256, 64
H1P, H2P, H3P = 256, 256, 128

_TILE_ROWS = 512   # max batch rows per grid step (review: 512-1024 sweet spot)
_ROW_ALIGN = 16    # bf16 sublane packing


def _round_up(x, m):
    return (x + m - 1) // m * m


# ----------------------------------------------------------------------------- kernels
def _mlp(x_ref, w1, b1, w2, b2, w3, b3, w4, b4):
    """4-layer MLP body: bf16 MXU inputs, f32 accumulation / bias add / ReLU."""
    h = x_ref[...]                                                       # bf16
    h = jnp.dot(h, w1[...], preferred_element_type=jnp.float32) + b1[...]
    h = jnp.maximum(h, 0.0).astype(jnp.bfloat16)
    h = jnp.dot(h, w2[...], preferred_element_type=jnp.float32) + b2[...]
    h = jnp.maximum(h, 0.0).astype(jnp.bfloat16)
    h = jnp.dot(h, w3[...], preferred_element_type=jnp.float32) + b3[...]
    h = jnp.maximum(h, 0.0).astype(jnp.bfloat16)
    q = jnp.dot(h, w4[...], preferred_element_type=jnp.float32) + b4[...]
    return q  # [bm, A_PAD] f32 (padded action columns are exactly 0)


def _forward_kernel(x_ref, w1, b1, w2, b2, w3, b3, w4, b4, q_ref):
    q_ref[...] = _mlp(x_ref, w1, b1, w2, b2, w3, b3, w4, b4).astype(q_ref.dtype)


def _act_kernel(x_ref, u_ref, w1, b1, w2, b2, w3, b3, w4, b4, q_ref, a_ref,
                *, n_actions, epsilon):
    q = _mlp(x_ref, w1, b1, w2, b2, w3, b3, w4, b4)
    q_bf = q.astype(jnp.bfloat16)
    q_ref[...] = q_bf

    # Greedy action = first index achieving the row max over the *real* action
    # columns (ties -> lowest index).  Computed on the bf16-rounded values so the
    # in-kernel argmax matches argmax of the returned Q slab exactly.
    qf = q_bf.astype(jnp.float32)
    lane = lax.broadcasted_iota(jnp.int32, qf.shape, 1)
    qm = jnp.where(lane < n_actions, qf, -jnp.inf)
    row_max = jnp.max(qm, axis=-1, keepdims=True)
    cand = jnp.where(qm == row_max, lane.astype(jnp.float32), jnp.float32(1e9))
    best = jnp.min(cand, axis=-1, keepdims=True).astype(jnp.int32)      # [bm, 1]

    # Epsilon-greedy select.  u_ref[:, 0] decides explore, u_ref[:, 1] picks the
    # random action; uniforms are generated device-side in the wrapper.
    u = u_ref[...]
    u_explore = u[:, 0:1]
    u_action = u[:, 1:2]
    rand_a = jnp.minimum((u_action * n_actions).astype(jnp.int32), n_actions - 1)
    a_ref[...] = jnp.where(u_explore < jnp.float32(epsilon), rand_a, best)


# ----------------------------------------------------------------------------- wrappers
def _prep(state):
    """Cast to bf16, pick batch tile, pad rows.  Returns (x, batch, bm, pb)."""
    x = state.astype(jnp.bfloat16)
    batch = x.shape[0]
    if batch <= 2 * 128:
        bm = _round_up(batch, _ROW_ALIGN)          # single tile; too small to split
    else:
        # >=2 grid steps (even count) so ("parallel",) can shard across v7x's two
        # TensorCores; tile capped so the ~0.35us per-step overhead stays amortized.
        n_tiles = max(2, pl.cdiv(batch, _TILE_ROWS))
        n_tiles += n_tiles % 2
        bm = min(_TILE_ROWS, _round_up(pl.cdiv(batch, n_tiles), _ROW_ALIGN))
    pb = _round_up(batch, bm)
    if pb != batch:
        x = jnp.pad(x, ((0, pb - batch), (0, 0)))
    return x, batch, bm, pb


def _weight_bias_specs(params):
    specs = []
    for n in range(1, 5):
        # Constant index_maps -> weights/biases stay VMEM-resident across grid steps.
        specs.append(pl.BlockSpec(params[f"w{n}"].shape, lambda i: (0, 0)))
        specs.append(pl.BlockSpec(params[f"b{n}"].shape, lambda i: (0, 0)))
    return specs


def _weight_bias_args(params):
    args = []
    for n in range(1, 5):
        args += [params[f"w{n}"], params[f"b{n}"]]
    return args


def _cost(pb, state_dim, a_pad, params):
    flops = 2 * pb * (state_dim * H1P + H1P * H2P + H2P * H3P + H3P * a_pad)
    w_bytes = sum(params[f"w{n}"].size * 2 for n in range(1, 5))   # bf16
    b_bytes = sum(params[f"b{n}"].size * 4 for n in range(1, 5))   # f32
    bytes_accessed = pb * state_dim * 2 + w_bytes + b_bytes + pb * a_pad * 2
    return pl.CostEstimate(flops=flops, transcendentals=0,
                           bytes_accessed=bytes_accessed)


def dqn_forward(state, params):
    """Matches DQNAgent.forward: returns Q-values [batch, n_actions] (f32)."""
    n_actions = params["n_actions"]
    a_pad = params["w4"].shape[1]
    x, batch, bm, pb = _prep(state)
    state_dim = x.shape[1]

    q_pad = pl.pallas_call(
        _forward_kernel,
        out_shape=jax.ShapeDtypeStruct((pb, a_pad), jnp.bfloat16),
        grid=(pb // bm,),
        in_specs=[pl.BlockSpec((bm, state_dim), lambda i: (i, 0))]
                 + _weight_bias_specs(params),
        out_specs=pl.BlockSpec((bm, a_pad), lambda i: (i, 0)),
        compiler_params=pltpu.CompilerParams(
            dimension_semantics=("parallel",)),
        cost_estimate=_cost(pb, state_dim, a_pad, params),
    )(x, *_weight_bias_args(params))
    return q_pad[:batch, :n_actions].astype(jnp.float32)


def dqn_forward_and_sample(state, params, key, epsilon):
    """Fused forward + epsilon-greedy: returns (qvalues [B, A] f32, actions [B] i32)."""
    n_actions = params["n_actions"]
    a_pad = params["w4"].shape[1]
    x, batch, bm, pb = _prep(state)
    state_dim = x.shape[1]

    # Device-side uniforms: column 0 -> explore decision, column 1 -> random action.
    u = jax.random.uniform(key, (pb, 2), jnp.float32)
    kernel = functools.partial(_act_kernel, n_actions=n_actions,
                               epsilon=float(epsilon))

    q_pad, act = pl.pallas_call(
        kernel,
        out_shape=(jax.ShapeDtypeStruct((pb, a_pad), jnp.bfloat16),
                   jax.ShapeDtypeStruct((pb, 1), jnp.int32)),
        grid=(pb // bm,),
        in_specs=[pl.BlockSpec((bm, state_dim), lambda i: (i, 0)),
                  pl.BlockSpec((bm, 2), lambda i: (i, 0))]
                 + _weight_bias_specs(params),
        out_specs=(pl.BlockSpec((bm, a_pad), lambda i: (i, 0)),
                   pl.BlockSpec((bm, 1), lambda i: (i, 0))),
        compiler_params=pltpu.CompilerParams(
            dimension_semantics=("parallel",)),
        cost_estimate=_cost(pb, state_dim, a_pad, params),
    )(x, u, *_weight_bias_args(params))
    return q_pad[:batch, :n_actions].astype(jnp.float32), act[:batch, 0]


# ----------------------------------------------------------------------------- params
def init_params(key, state_dim, n_actions):
    """nn.Linear-style U(-1/sqrt(fan_in), 1/sqrt(fan_in)) init, zero-padded to
    lane-multiple widths; weights stored bf16 ([in, out]), biases f32 ([1, out])."""
    a_pad = _round_up(max(n_actions, 1), 128)
    dims = [(state_dim, H1), (H1, H2), (H2, H3), (H3, n_actions)]
    pdims = [(state_dim, H1P), (H1P, H2P), (H2P, H3P), (H3P, a_pad)]
    params = {"n_actions": n_actions}
    for n, ((fi, fo), (pfi, pfo)) in enumerate(zip(dims, pdims), start=1):
        key, kw, kb = jax.random.split(key, 3)
        bound = 1.0 / (fi ** 0.5)
        w = jax.random.uniform(kw, (fi, fo), jnp.float32, -bound, bound)
        b = jax.random.uniform(kb, (fo,), jnp.float32, -bound, bound)
        wp = jnp.zeros((pfi, pfo), jnp.float32).at[:fi, :fo].set(w)
        bp = jnp.zeros((1, pfo), jnp.float32).at[0, :fo].set(b)
        params[f"w{n}"] = wp.astype(jnp.bfloat16)   # MXU-native storage
        params[f"b{n}"] = bp                        # bias add / ReLU stay f32
    return params


def reference_forward(state, params):
    """Plain-JAX reference using the same (bf16-quantized, padded) weights/inputs,
    f32 activations.  NOTE: results differ slightly from an f32 PyTorch DQNAgent
    because weights/activations are bf16-quantized in the kernel."""
    n_actions = params["n_actions"]
    h = state.astype(jnp.bfloat16).astype(jnp.float32)
    for n in range(1, 4):
        h = jnp.maximum(h @ params[f"w{n}"].astype(jnp.float32) + params[f"b{n}"], 0.0)
    q = h @ params["w4"].astype(jnp.float32) + params["b4"]
    return q[:, :n_actions]


if __name__ == "__main__":
    key = jax.random.PRNGKey(0)
    batch, state_dim, n_actions = 8, 32, 4

    kx, kp, ku = jax.random.split(key, 3)
    state = jax.random.normal(kx, (batch, state_dim), jnp.float32)
    params = init_params(kp, state_dim, n_actions)

    # forward (Q-values) path
    q = dqn_forward(state, params)
    jax.block_until_ready(q)
    ref = reference_forward(state, params)
    assert q.shape == (batch, n_actions)
    assert jnp.allclose(q, ref, atol=3e-2, rtol=3e-2), \
        float(jnp.max(jnp.abs(q - ref)))

    # fused acting path; epsilon=0 -> pure greedy, deterministic, must equal argmax(q)
    q2, actions = dqn_forward_and_sample(state, params, ku, epsilon=0.0)
    jax.block_until_ready((q2, actions))
    assert actions.shape == (batch,)
    assert jnp.array_equal(actions, jnp.argmax(q2, axis=-1))

    # exploratory path just has to produce valid action indices
    q3, actions3 = dqn_forward_and_sample(state, params, ku, epsilon=0.5)
    jax.block_until_ready((q3, actions3))
    assert bool(jnp.all((actions3 >= 0) & (actions3 < n_actions)))

    # TODO(synk): get_qvalues' torch-tensor/.cpu().numpy() host plumbing is not a
    # kernel-side concern and is intentionally not reproduced here.
    print("KERNEL_OK")
</pallas_src>

<mosaic_0001>
module attributes {stable_mosaic.version = 11 : i64} {
  func.func @_forward_kernel(%arg0: i32, %arg1: memref<16x32xbf16, #tpu.memory_space<vmem>>, %arg2: memref<32x256xbf16, #tpu.memory_space<vmem>>, %arg3: memref<1x256xf32, #tpu.memory_space<vmem>>, %arg4: memref<256x256xbf16, #tpu.memory_space<vmem>>, %arg5: memref<1x256xf32, #tpu.memory_space<vmem>>, %arg6: memref<256x128xbf16, #tpu.memory_space<vmem>>, %arg7: memref<1x128xf32, #tpu.memory_space<vmem>>, %arg8: memref<128x128xbf16, #tpu.memory_space<vmem>>, %arg9: memref<1x128xf32, #tpu.memory_space<vmem>>, %arg10: memref<16x128xbf16, #tpu.memory_space<vmem>>) attributes {dimension_semantics = [#tpu.dimension_semantics<parallel>], iteration_bounds = array<i64: 1>, scalar_prefetch = 0 : i64, scratch_operands = 0 : i64, tpu.core_type = #tpu.core_type<tc>, window_params = [{transform_indices = @transform_0, window_bounds = array<i64: 16, 32>}, {pipeline_mode = #tpu.pipeline_mode<synchronous>, transform_indices = @transform_1, window_bounds = array<i64: 32, 256>}, {pipeline_mode = #tpu.pipeline_mode<synchronous>, transform_indices = @transform_2, window_bounds = array<i64: 1, 256>}, {pipeline_mode = #tpu.pipeline_mode<synchronous>, transform_indices = @transform_3, window_bounds = array<i64: 256, 256>}, {pipeline_mode = #tpu.pipeline_mode<synchronous>, transform_indices = @transform_4, window_bounds = array<i64: 1, 256>}, {pipeline_mode = #tpu.pipeline_mode<synchronous>, transform_indices = @transform_5, window_bounds = array<i64: 256, 128>}, {pipeline_mode = #tpu.pipeline_mode<synchronous>, transform_indices = @transform_6, window_bounds = array<i64: 1, 128>}, {pipeline_mode = #tpu.pipeline_mode<synchronous>, transform_indices = @transform_7, window_bounds = array<i64: 128, 128>}, {pipeline_mode = #tpu.pipeline_mode<synchronous>, transform_indices = @transform_8, window_bounds = array<i64: 1, 128>}, {transform_indices = @transform_9, window_bounds = array<i64: 16, 128>}]} {
    %c0 = arith.constant 0 : index
    %c0_0 = arith.constant 0 : index
    %0 = vector.load %arg1[%c0, %c0_0] : memref<16x32xbf16, #tpu.memory_space<vmem>>, vector<16x32xbf16>
    %c0_1 = arith.constant 0 : index
    %c0_2 = arith.constant 0 : index
    %1 = vector.load %arg2[%c0_1, %c0_2] : memref<32x256xbf16, #tpu.memory_space<vmem>>, vector<32x256xbf16>
    %cst = arith.constant dense<0.000000e+00> : vector<16x256xf32>
    %2 = tpu.matmul %0, %1, %cst {dimension_numbers = #tpu.dot_dimension_numbers<[1], [0], [0], [1], [0, 0, 1, 1], [], []>} : vector<16x32xbf16>, vector<32x256xbf16>, vector<16x256xf32> -> vector<16x256xf32>
    %c0_3 = arith.constant 0 : index
    %c0_4 = arith.constant 0 : index
    %3 = vector.load %arg3[%c0_3, %c0_4] : memref<1x256xf32, #tpu.memory_space<vmem>>, vector<1x256xf32>
    %4 = vector.broadcast %3 : vector<1x256xf32> to vector<16x256xf32>
    %5 = arith.addf %2, %4 : vector<16x256xf32>
    %cst_5 = arith.constant 0.000000e+00 : f32
    %6 = vector.broadcast %cst_5 : f32 to vector<16x256xf32>
    %7 = arith.maximumf %5, %6 : vector<16x256xf32>
    %8 = arith.truncf %7 : vector<16x256xf32> to vector<16x256xbf16>
    %c0_6 = arith.constant 0 : index
    %c0_7 = arith.constant 0 : index
    %9 = vector.load %arg4[%c0_6, %c0_7] : memref<256x256xbf16, #tpu.memory_space<vmem>>, vector<256x256xbf16>
    %cst_8 = arith.constant dense<0.000000e+00> : vector<16x256xf32>
    %10 = tpu.matmul %8, %9, %cst_8 {dimension_numbers = #tpu.dot_dimension_numbers<[1], [0], [0], [1], [0, 0, 1, 1], [], []>} : vector<16x256xbf16>, vector<256x256xbf16>, vector<16x256xf32> -> vector<16x256xf32>
    %c0_9 = arith.constant 0 : index
    %c0_10 = arith.constant 0 : index
    %11 = vector.load %arg5[%c0_9, %c0_10] : memref<1x256xf32, #tpu.memory_space<vmem>>, vector<1x256xf32>
    %12 = vector.broadcast %11 : vector<1x256xf32> to vector<16x256xf32>
    %13 = arith.addf %10, %12 : vector<16x256xf32>
    %cst_11 = arith.constant 0.000000e+00 : f32
    %14 = vector.broadcast %cst_11 : f32 to vector<16x256xf32>
    %15 = arith.maximumf %13, %14 : vector<16x256xf32>
    %16 = arith.truncf %15 : vector<16x256xf32> to vector<16x256xbf16>
    %c0_12 = arith.constant 0 : index
    %c0_13 = arith.constant 0 : index
    %17 = vector.load %arg6[%c0_12, %c0_13] : memref<256x128xbf16, #tpu.memory_space<vmem>>, vector<256x128xbf16>
    %cst_14 = arith.constant dense<0.000000e+00> : vector<16x128xf32>
    %18 = tpu.matmul %16, %17, %cst_14 {dimension_numbers = #tpu.dot_dimension_numbers<[1], [0], [0], [1], [0, 0, 1, 1], [], []>} : vector<16x256xbf16>, vector<256x128xbf16>, vector<16x128xf32> -> vector<16x128xf32>
    %c0_15 = arith.constant 0 : index
    %c0_16 = arith.constant 0 : index
    %19 = vector.load %arg7[%c0_15, %c0_16] : memref<1x128xf32, #tpu.memory_space<vmem>>, vector<1x128xf32>
    %20 = vector.broadcast %19 : vector<1x128xf32> to vector<16x128xf32>
    %21 = arith.addf %18, %20 : vector<16x128xf32>
    %cst_17 = arith.constant 0.000000e+00 : f32
    %22 = vector.broadcast %cst_17 : f32 to vector<16x128xf32>
    %23 = arith.maximumf %21, %22 : vector<16x128xf32>
    %24 = arith.truncf %23 : vector<16x128xf32> to vector<16x128xbf16>
    %c0_18 = arith.constant 0 : index
    %c0_19 = arith.constant 0 : index
    %25 = vector.load %arg8[%c0_18, %c0_19] : memref<128x128xbf16, #tpu.memory_space<vmem>>, vector<128x128xbf16>
    %cst_20 = arith.constant dense<0.000000e+00> : vector<16x128xf32>
    %26 = tpu.matmul %24, %25, %cst_20 {dimension_numbers = #tpu.dot_dimension_numbers<[1], [0], [0], [1], [0, 0, 1, 1], [], []>} : vector<16x128xbf16>, vector<128x128xbf16>, vector<16x128xf32> -> vector<16x128xf32>
    %c0_21 = arith.constant 0 : index
    %c0_22 = arith.constant 0 : index
    %27 = vector.load %arg9[%c0_21, %c0_22] : memref<1x128xf32, #tpu.memory_space<vmem>>, vector<1x128xf32>
    %28 = vector.broadcast %27 : vector<1x128xf32> to vector<16x128xf32>
    %29 = arith.addf %26, %28 : vector<16x128xf32>
    %30 = arith.truncf %29 : vector<16x128xf32> to vector<16x128xbf16>
    %c0_23 = arith.constant 0 : index
    %c0_24 = arith.constant 0 : index
    %31 = vector.load %arg10[%c0_23, %c0_24] : memref<16x128xbf16, #tpu.memory_space<vmem>>, vector<16x128xbf16>
    tpu.vector_store %arg10[%c0_23, %c0_24], %30 {strides = array<i32>} : memref<16x128xbf16, #tpu.memory_space<vmem>>, vector<16x128xbf16>,
    return
  }
  func.func @transform_0(%arg0: i32) -> (i32, i32) {
    %c0_i32 = arith.constant 0 : i32
    %c0_i32_0 = arith.constant 0 : i32
    return %arg0, %c0_i32 : i32, i32
  }
  func.func @transform_1(%arg0: i32) -> (i32, i32) {
    %c0_i32 = arith.constant 0 : i32
    %c0_i32_0 = arith.constant 0 : i32
    %c0_i32_1 = arith.constant 0 : i32
    return %c0_i32, %c0_i32_0 : i32, i32
  }
  func.func @transform_2(%arg0: i32) -> (i32, i32) {
    %c0_i32 = arith.constant 0 : i32
    %c0_i32_0 = arith.constant 0 : i32
    %c0_i32_1 = arith.constant 0 : i32
    return %c0_i32, %c0_i32_0 : i32, i32
  }
  func.func @transform_3(%arg0: i32) -> (i32, i32) {
    %c0_i32 = arith.constant 0 : i32
    %c0_i32_0 = arith.constant 0 : i32
    %c0_i32_1 = arith.constant 0 : i32
    return %c0_i32, %c0_i32_0 : i32, i32
  }
  func.func @transform_4(%arg0: i32) -> (i32, i32) {
    %c0_i32 = arith.constant 0 : i32
    %c0_i32_0 = arith.constant 0 : i32
    %c0_i32_1 = arith.constant 0 : i32
    return %c0_i32, %c0_i32_0 : i32, i32
  }
  func.func @transform_5(%arg0: i32) -> (i32, i32) {
    %c0_i32 = arith.constant 0 : i32
    %c0_i32_0 = arith.constant 0 : i32
    %c0_i32_1 = arith.constant 0 : i32
    return %c0_i32, %c0_i32_0 : i32, i32
  }
  func.func @transform_6(%arg0: i32) -> (i32, i32) {
    %c0_i32 = arith.constant 0 : i32
    %c0_i32_0 = arith.constant 0 : i32
    %c0_i32_1 = arith.constant 0 : i32
    return %c0_i32, %c0_i32_0 : i32, i32
  }
  func.func @transform_7(%arg0: i32) -> (i32, i32) {
    %c0_i32 = arith.constant 0 : i32
    %c0_i32_0 = arith.constant 0 : i32
    %c0_i32_1 = arith.constant 0 : i32
    return %c0_i32, %c0_i32_0 : i32, i32
  }
  func.func @transform_8(%arg0: i32) -> (i32, i32) {
    %c0_i32 = arith.constant 0 : i32
    %c0_i32_0 = arith.constant 0 : i32
    %c0_i32_1 = arith.constant 0 : i32
    return %c0_i32, %c0_i32_0 : i32, i32
  }
  func.func @transform_9(%arg0: i32) -> (i32, i32) {
    %c0_i32 = arith.constant 0 : i32
    %c0_i32_0 = arith.constant 0 : i32
    return %arg0, %c0_i32 : i32, i32
  }
}

</mosaic_0001>

<bundles_post_ra>
// kernel: tpu_custom_call.1
= control target key start
LH: loop header
LB: loop body
LE: loop exit
PB: predicated region body
PF: predicated region fallthrough
CT: control target
= control target key end

     0   :  { %14 = vsyncpa [#allocation3], 0  ;;  %s1292_s0 = inlined_call_operand.hbm [shape: bf16[16,32], index: 0, kind: input, shape index: {}]   ;;  %s1293_s1 = inlined_call_operand.hbm [shape: bf16[32,256], index: 1, kind: input, shape index: {}]   ;;  %s1294_s2 = inlined_call_operand.vmem [shape: f32[1,256], index: 2, kind: input, shape index: {}]   ;;  %s1295_s3 = inlined_call_operand.hbm [shape: bf16[256,256], index: 3, kind: input, shape index: {}]   ;;  %s1296_s4 = inlined_call_operand.vmem [shape: f32[1,256], index: 4, kind: input, shape index: {}]   ;;  %s1297_s5 = inlined_call_operand.hbm [shape: bf16[256,128], index: 5, kind: input, shape index: {}]   ;;  %s1298_s6 = inlined_call_operand.vmem [shape: f32[1,128], index: 6, kind: input, shape index: {}]   ;;  %s1299_s7 = inlined_call_operand.hbm [shape: bf16[128,128], index: 7, kind: input, shape index: {}]   ;;  %s1300_s8 = inlined_call_operand.vmem [shape: f32[1,128], index: 8, kind: input, shape index: {}]   ;;  %s1301_s9 = inlined_call_operand.hbm [shape: bf16[16,128], index: 9, kind: output, shape index: {}]  }
   0x1   :  { %15 = vsyncpa [#allocation6], 0 }
   0x2   :  { %16 = vsyncpa [#allocation9], 0 }
   0x3   :  { %17 = vsyncpa [#allocation4], 0  ;;  %s1127_s30 = smov [#allocation5]   ;;  %s987_s13 = scalar_lea.hbm %s1293_s1, 512 }
   0x4   :  { %s35_s10 = sshll.u32 %s1127_s30, 4  ;;  %p988_p0 = scmp.ne.s32.totalorder %s1293_s1, %s987_s13  ;;  %s36_s10 = int_to_ptr.vmem [resolvable:$true] %s35_s10 }
   0x5   :  { %p991_p1 = scmp.lt.u32.totalorder %s987_s13, %s1293_s1 }
   0x7   :  { %p993_p2 = pnand %p991_p1, %p988_p0 }
   0x9   :  { %996 = shalt.err (!%p993_p2)
}
   0xa   :  { %s997_s18 = scalar_lea.vmem %s36_s10, 512  ;;  %p1002_p4 = scmp.lt.s32.totalorder %s36_s10, %s36_s10 }
   0xb   :  { %p998_p3 = scmp.ne.s32.totalorder %s36_s10, %s997_s18  ;;  %p1003_p5 = scmp.lt.s32.totalorder %s997_s18, %s997_s18 }
   0xd   :  { %p1004_p6 = por %p1003_p5, %p1002_p4 }
   0xf   :  { %p1005_p7 = pnand %p1004_p6, %p998_p3 }
  0x11   :  { %1008 = shalt.err (!%p1005_p7)
}
  0x12   :  { %s1128_s19 = smov 128   ;;  %s1129_s20 = smov 8  }
  0x13   :  { %41 = dma.hbm_to_vmem [thread:$0]  %s1293_s1, 512, %s36_s10, [#allocation6], %s1128_s19, %s1128_s19, %s1129_s20  }
  0x14   :  { %s1130_s23 = smov [#allocation8]   ;;  %s1131_s25 = smov [#allocation2]  }
  0x15   :  { %s63_s24 = sshll.u32 %s1130_s23, 4  ;;  %s23_s26 = sshll.u32 %s1131_s25, 4  ;;  %s64_s24 = int_to_ptr.vmem [resolvable:$true] %s63_s24  ;;  %s24_s26 = int_to_ptr.vmem [resolvable:$true] %s23_s26 }
  0x16   :  { %s1009_s29 = scalar_lea.hbm %s1297_s5, 2048 }
  0x17   :  { %p1010_p8 = scmp.ne.s32.totalorder %s1297_s5, %s1009_s29  ;;  %p1013_p9 = scmp.lt.u32.totalorder %s1009_s29, %s1297_s5 }
  0x19   :  { %p1015_p10 = pnand %p1013_p9, %p1010_p8 }
  0x1b   :  { %1018 = shalt.err (!%p1015_p10)
}
  0x1c   :  { %s1019_s1 = scalar_lea.vmem %s64_s24, 2048  ;;  %p1024_p12 = scmp.lt.s32.totalorder %s64_s24, %s64_s24 }
  0x1d   :  { %p1020_p11 = scmp.ne.s32.totalorder %s64_s24, %s1019_s1  ;;  %p1025_p13 = scmp.lt.s32.totalorder %s1019_s1, %s1019_s1 }
  0x1f   :  { %p1026_p0 = por %p1025_p13, %p1024_p12 }
  0x21   :  { %p1027_p1 = pnand %p1026_p0, %p1020_p11 }
  0x23   :  { %1030 = shalt.err (!%p1027_p1)
}
  0x24   :  { %s1132_s10 = smov 64   ;;  %s1133_s14 = smov 4  }
  0x25   :  { %69 = dma.hbm_to_vmem [thread:$0]  %s1297_s5, 2048, %s64_s24, [#allocation9], %s1132_s10, %s1132_s10, %s1133_s14  }
  0x26   :  { %s1031_s21 = scalar_lea.hbm %s1292_s0, 128 }
  0x27   :  { %p1032_p2 = scmp.ne.s32.totalorder %s1292_s0, %s1031_s21  ;;  %p1035_p3 = scmp.lt.u32.totalorder %s1031_s21, %s1292_s0 }
  0x29   :  { %p1037_p4 = pnand %p1035_p3, %p1032_p2 }
  0x2b   :  { %1040 = shalt.err (!%p1037_p4)
}
  0x2c   :  { %s1041_s28 = scalar_lea.vmem %s24_s26, 128  ;;  %p1046_p6 = scmp.lt.s32.totalorder %s24_s26, %s24_s26 }
  0x2d   :  { %p1042_p5 = scmp.ne.s32.totalorder %s24_s26, %s1041_s28  ;;  %p1047_p7 = scmp.lt.s32.totalorder %s1041_s28, %s1041_s28 }
  0x2f   :  { %p1048_p8 = por %p1047_p7, %p1046_p6 }
  0x31   :  { %p1049_p9 = pnand %p1048_p8, %p1042_p5 }
  0x33   :  { %1052 = shalt.err (!%p1049_p9)
}
  0x34   :  { %29 = dma.hbm_to_vmem [thread:$0]  %s1292_s0, 128, %s24_s26, [#allocation3], %s1132_s10, %s1132_s10, %s1133_s14  }
  0x35   :  { %s1134_s29 = smov [#allocation7]   ;;  %s1135_s11 = smov [#allocation10]  }
  0x36   :  { %s49_s30 = sshll.u32 %s1134_s29, 4  ;;  %s77_s12 = sshll.u32 %s1135_s11, 4  ;;  %s50_s30 = int_to_ptr.vmem [resolvable:$true] %s49_s30  ;;  %s78_s12 = int_to_ptr.vmem [resolvable:$true] %s77_s12 }
  0x37   :  { %s1053_s15 = scalar_lea.hbm %s1295_s3, 4096 }
  0x38   :  { %p1054_p10 = scmp.ne.s32.totalorder %s1295_s3, %s1053_s15  ;;  %p1057_p11 = scmp.lt.u32.totalorder %s1053_s15, %s1295_s3 }
  0x3a   :  { %p1059_p12 = pnand %p1057_p11, %p1054_p10 }
  0x3c   :  { %1062 = shalt.err (!%p1059_p12)
}
  0x3d   :  { %s1063_s0 = scalar_lea.vmem %s50_s30, 4096  ;;  %p1068_p0 = scmp.lt.s32.totalorder %s50_s30, %s50_s30 }
  0x3e   :  { %p1064_p13 = scmp.ne.s32.totalorder %s50_s30, %s1063_s0  ;;  %p1069_p1 = scmp.lt.s32.totalorder %s1063_s0, %s1063_s0 }
  0x40   :  { %p1070_p2 = por %p1069_p1, %p1068_p0 }
  0x42   :  { %p1071_p3 = pnand %p1070_p2, %p1064_p13 }
  0x44   :  { %1074 = shalt.err (!%p1071_p3)
}
  0x45   :  { %55 = dma.hbm_to_vmem [thread:$0]  %s1295_s3, 4096, %s50_s30, [#allocation6], %s1128_s19, %s1128_s19, %s1129_s20  }
  0x46   :  { %s1075_s27 = scalar_lea.hbm %s1299_s7, 1024 }
  0x47   :  { %p1076_p4 = scmp.ne.s32.totalorder %s1299_s7, %s1075_s27  ;;  %p1079_p5 = scmp.lt.u32.totalorder %s1075_s27, %s1299_s7 }
  0x49   :  { %p1081_p6 = pnand %p1079_p5, %p1076_p4 }
  0x4b   :  { %1084 = shalt.err (!%p1081_p6)
}
  0x4c   :  { %s1085_s11 = scalar_lea.vmem %s78_s12, 1024  ;;  %p1090_p8 = scmp.lt.s32.totalorder %s78_s12, %s78_s12 }
  0x4d   :  { %p1086_p7 = scmp.ne.s32.totalorder %s78_s12, %s1085_s11  ;;  %p1091_p9 = scmp.lt.s32.totalorder %s1085_s11, %s1085_s11 }
  0x4f   :  { %p1092_p10 = por %p1091_p9, %p1090_p8 }
  0x51   :  { %p1093_p11 = pnand %p1092_p10, %p1086_p7 }
  0x53   :  { %1096 = shalt.err (!%p1093_p11)
}
  0x54   :  { %83 = dma.hbm_to_vmem [thread:$0]  %s1299_s7, 1024, %s78_s12, [#allocation9], %s1132_s10, %s1132_s10, %s1133_s14  }
  0x55   :  { %1119 = dma.done.wait [#allocation3], 128  }
  0x56   :  { %1120 = vsyncadd [#allocation3], 4294967168 }
  0x57   :  { %1121 = dma.done.wait [#allocation6], 4608  }
  0x58   :  { %1122 = vsyncadd [#allocation6], 4294962688 }
  0x59   :  { %1123 = dma.done.wait [#allocation9], 3072  }
  0x5a   :  { %1124 = vsyncadd [#allocation9], 4294964224  ;;  %v1136_v0 = vmov 0   ;;  %v908_v1 = vld [vmem:[#allocation5 + $0x4] ss:$8 sps:$4 sm:$0xff]   ;;  %v914_v8 = vld [vmem:[#allocation2] sm:$0xff]   ;;  %v110_v49 = vlaneseq }
  0x5b   :  { %181 = vmatprep.mubr.bf16.mxu0 %v1136_v0  ;;  %v910_v2 = vld [vmem:[#allocation5] ss:$8 sps:$4 sm:$0xff]   ;;  %149 = vmatprep.subr.bf16.mxu0 %v908_v1  ;;  %v911_v3 = vld [vmem:[#allocation5 + $0x14] ss:$8 sps:$4 sm:$0xff]   ;;  %v913_v4 = vld [vmem:[#allocation5 + $0x10] ss:$8 sps:$4 sm:$0xff]  }
  0x5c   :  { %150 = vmatpush1.bf16.msra.mxu0 %v910_v2  ;;  %v915_v5 = vld [vmem:[#allocation7 + $0x4] ss:$8 sps:$4 sm:$0xff]   ;;  %v917_v6 = vld [vmem:[#allocation7] ss:$8 sps:$4 sm:$0xff]   ;;  %v918_v7 = vld [vmem:[#allocation7 + $0x14] ss:$8 sps:$4 sm:$0xff]  }
  0x5d   :  { %151 = vmatprep.subr.bf16.mxu0 %v911_v3  ;;  %402 = vmatprep.subr.bf16.mxu1 %v915_v5  ;;  %vm145_vm0 = vcmask 261120   ;;  %v920_v9 = vld [vmem:[#allocation7 + $0x10] ss:$8 sps:$4 sm:$0xff]   ;;  %v921_v10 = vld [vmem:[#allocation7 + $0x24] ss:$8 sps:$4 sm:$0xff]   ;;  %v111_v50 = vshrl.u32 %v110_v49, 7 }
  0x5e   :  { %403 = vmatpush1.bf16.msra.mxu1 %v917_v6  ;;  %v923_v11 = vld [vmem:[#allocation7 + $0x20] ss:$8 sps:$4 sm:$0xff]   ;;  %v924_v12 = vld [vmem:[#allocation7 + $0x34] ss:$8 sps:$4 sm:$0xff]   ;;  %v926_v13 = vld [vmem:[#allocation7 + $0x30] ss:$8 sps:$4 sm:$0xff]  }
  0x5f   :  { %404 = vmatprep.subr.bf16.mxu1 %v918_v7  ;;  %v927_v14 = vld [vmem:[#allocation7 + $0x44] ss:$8 sps:$4 sm:$0xff]   ;;  %v929_v15 = vld [vmem:[#allocation7 + $0x40] ss:$8 sps:$4 sm:$0xff]   ;;  %v930_v16 = vld [vmem:[#allocation7 + $0x54] ss:$8 sps:$4 sm:$0xff]  }
  0x60   :  { %152 = vmatpush1.bf16.msra.mxu0 %v913_v4  ;;  %v932_v17 = vld [vmem:[#allocation7 + $0x50] ss:$8 sps:$4 sm:$0xff]   ;;  %v933_v18 = vld [vmem:[#allocation7 + $0x64] ss:$8 sps:$4 sm:$0xff]   ;;  %v935_v19 = vld [vmem:[#allocation7 + $0x60] ss:$8 sps:$4 sm:$0xff]  }
  0x61   :  { %v936_v20 = vld [vmem:[#allocation7 + $0x74] ss:$8 sps:$4 sm:$0xff]   ;;  %v938_v21 = vld [vmem:[#allocation7 + $0x70] ss:$8 sps:$4 sm:$0xff]   ;;  %v939_v22 = vld [vmem:[#allocation7 + $0x84] ss:$8 sps:$4 sm:$0xff]  }
  0x62   :  { %405 = vmatpush1.bf16.msra.mxu1 %v920_v9  ;;  %v941_v23 = vld [vmem:[#allocation7 + $0x80] ss:$8 sps:$4 sm:$0xff]   ;;  %v942_v24 = vld [vmem:[#allocation7 + $0x94] ss:$8 sps:$4 sm:$0xff]   ;;  %v944_v25 = vld [vmem:[#allocation7 + $0x90] ss:$8 sps:$4 sm:$0xff]  }
  0x63   :  { %776 = vmatmul.mubr.msk.bf16.vlgmr.msra.gmra.mrb[0].mxu0 %vm145_vm0, %v914_v8  ;;  %406 = vmatprep.subr.bf16.mxu1 %v921_v10  ;;  %v945_v26 = vld [vmem:[#allocation7 + $0xa4] ss:$8 sps:$4 sm:$0xff]   ;;  %v947_v27 = vld [vmem:[#allocation7 + $0xa0] ss:$8 sps:$4 sm:$0xff]   ;;  %v948_v28 = vld [vmem:[#allocation7 + $0xb4] ss:$8 sps:$4 sm:$0xff]  }
  0x64   :  { %v950_v29 = vld [vmem:[#allocation7 + $0xb0] ss:$8 sps:$4 sm:$0xff]   ;;  %v951_v30 = vld [vmem:[#allocation7 + $0xc4] ss:$8 sps:$4 sm:$0xff]   ;;  %v953_v31 = vld [vmem:[#allocation7 + $0xc0] ss:$8 sps:$4 sm:$0xff]  }
  0x65   :  { %v954_v32 = vld [vmem:[#allocation7 + $0xd4] ss:$8 sps:$4 sm:$0xff]   ;;  %v956_v33 = vld [vmem:[#allocation7 + $0xd0] ss:$8 sps:$4 sm:$0xff]   ;;  %v957_v34 = vld [vmem:[#allocation7 + $0xe4] ss:$8 sps:$4 sm:$0xff]  }
  0x66   :  { %407 = vmatpush1.bf16.msra.mxu1 %v923_v11  ;;  %v959_v35 = vld [vmem:[#allocation7 + $0xe0] ss:$8 sps:$4 sm:$0xff]   ;;  %v960_v36 = vld [vmem:[#allocation7 + $0xf4] ss:$8 sps:$4 sm:$0xff]   ;;  %v962_v37 = vld [vmem:[#allocation7 + $0xf0] ss:$8 sps:$4 sm:$0xff]  }
  0x67   :  { %408 = vmatprep.subr.bf16.mxu1 %v924_v12  ;;  %v963_v38 = vld [vmem:[#allocation8 + $0x40] sm:$0xff]   ;;  %v965_v40 = vld [vmem:[#allocation8 + $0x48] sm:$0xff]   ;;  %v967_v42 = vld [vmem:[#allocation8 + $0x50] sm:$0xff]   ;;  %v112_v51 = vsub.s32 0, %v111_v50  ;;  %v116_v53 = vsub.s32 1, %v111_v50  ;;  %v1137_v11 = vmov 0.0  }
  0x68   :  { %v964_v39 = vld [vmem:[#allocation8] sm:$0xff]   ;;  %844 = vmatprep.subr.bf16.mxu0 %v963_v38  ;;  %v966_v41 = vld [vmem:[#allocation8 + $0x8] sm:$0xff]   ;;  %v968_v43 = vld [vmem:[#allocation8 + $0x10] sm:$0xff]   ;;  %vm1138_vm1 = vmmov 0   ;;  %s1139_s15 = smov [#allocation11]  }
  0x69   :  { %845 = vmatpush3.bf16.msra.mxu0 %v964_v39  ;;  %v969_v44 = vld [vmem:[#allocation8 + $0x58] sm:$0xff]   ;;  %v971_v46 = vld [vmem:[#allocation8 + $0x60] sm:$0xff]   ;;  %v973_v48 = vld [vmem:[#allocation8 + $0x68] sm:$0xff]  }
  0x6a   :  { %409 = vmatpush1.bf16.msra.mxu1 %v926_v13  ;;  %846 = vmatprep.subr.bf16.mxu0 %v965_v40  ;;  %v970_v45 = vld [vmem:[#allocation8 + $0x18] sm:$0xff]   ;;  %v972_v47 = vld [vmem:[#allocation8 + $0x20] sm:$0xff]   ;;  %v974_v6 = vld [vmem:[#allocation8 + $0x28] sm:$0xff]  }
  0x6b   :  { %410 = vmatprep.subr.bf16.mxu1 %v927_v14  ;;  %v108_v52 = vld [vmem:[%s1294_s2] sm:$0x3]  ;;  %v975_v7 = vld [vmem:[#allocation8 + $0x70] sm:$0xff]  }
  0x6c   :  { %v113_v54 = vrot.slane %v108_v52, %v112_v51  ;;  %v117_v55 = vrot.slane %v108_v52, %v116_v53  ;;  %v976_v8 = vld [vmem:[#allocation8 + $0x30] sm:$0xff]   ;;  %v977_v9 = vld [vmem:[#allocation8 + $0x78] sm:$0xff]  }
  0x6d   :  { %847 = vmatpush3.bf16.msra.mxu0 %v966_v41  ;;  %v978_v10 = vld [vmem:[#allocation8 + $0x38] sm:$0xff]  }
  0x6e   :  { %411 = vmatpush1.bf16.msra.mxu1 %v929_v15  ;;  %848 = vmatprep.subr.bf16.mxu0 %v967_v42  ;;  %v230_v12 = vld [vmem:[%s1296_s4] sm:$0x3] }
  0x6f   :  { %412 = vmatprep.subr.bf16.mxu1 %v930_v16  ;;  %v235_v13 = vrot.slane %v230_v12, %v112_v51  ;;  %v239_v14 = vrot.slane %v230_v12, %v116_v53  ;;  %v809_v38 = vld [vmem:[%s1298_s6] ss:$0 sm:$0xff]  ;;  %s757_s6 = sshll.u32 %s1139_s15, 4  ;;  %s758_s6 = int_to_ptr.vmem [resolvable:$true] %s757_s6 }
  0x70   :  { %v826_v49 = vld [vmem:[%s1300_s8] ss:$0 sm:$0xff]  ;;  %s1097_s16 = scalar_lea.vmem %s758_s6, 128  ;;  %p1102_p13 = scmp.lt.s32.totalorder %s758_s6, %s758_s6 }
  0x71   :  { %849 = vmatpush3.bf16.msra.mxu0 %v968_v43  ;;  %p1098_p12 = scmp.ne.s32.totalorder %s758_s6, %s1097_s16  ;;  %p1103_p0 = scmp.lt.s32.totalorder %s1097_s16, %s1097_s16 }
  0x72   :  { %413 = vmatpush1.bf16.msra.mxu1 %v932_v17  ;;  %850 = vmatprep.subr.bf16.mxu0 %v969_v44 }
  0x73   :  { %414 = vmatprep.subr.bf16.mxu1 %v933_v18  ;;  %p1104_p1 = por %p1103_p0, %p1102_p13 }
  0x75   :  { %851 = vmatpush3.bf16.msra.mxu0 %v970_v45  ;;  %p1105_p2 = pnand %p1104_p1, %p1098_p12 }
  0x76   :  { %415 = vmatpush1.bf16.msra.mxu1 %v935_v19  ;;  %852 = vmatprep.subr.bf16.mxu0 %v971_v46 }
  0x77   :  { %416 = vmatprep.subr.bf16.mxu1 %v936_v20 }
  0x79   :  { %853 = vmatpush3.bf16.msra.mxu0 %v972_v47 }
  0x7a   :  { %417 = vmatpush1.bf16.msra.mxu1 %v938_v21  ;;  %854 = vmatprep.subr.bf16.mxu0 %v973_v48 }
  0x7b   :  { %418 = vmatprep.subr.bf16.mxu1 %v939_v22 }
  0x7d   :  { %855 = vmatpush3.bf16.msra.mxu0 %v974_v6 }
  0x7e   :  { %419 = vmatpush1.bf16.msra.mxu1 %v941_v23  ;;  %856 = vmatprep.subr.bf16.mxu0 %v975_v7 }
  0x7f   :  { %420 = vmatprep.subr.bf16.mxu1 %v942_v24 }
  0x81   :  { %857 = vmatpush3.bf16.msra.mxu0 %v976_v8 }
  0x82   :  { %421 = vmatpush1.bf16.msra.mxu1 %v944_v25  ;;  %858 = vmatprep.subr.bf16.mxu0 %v977_v9 }
  0x83   :  { %422 = vmatprep.subr.bf16.mxu1 %v945_v26 }
  0x85   :  { %859 = vmatpush3.bf16.msra.mxu0 %v978_v10 }
  0x86   :  { %423 = vmatpush1.bf16.msra.mxu1 %v947_v27  ;;  %875 = vmatprep.subr.bf16.mxu0 %v1137_v11 }
  0x87   :  { %424 = vmatprep.subr.bf16.mxu1 %v948_v28 }
  0x8a   :  { %425 = vmatpush1.bf16.msra.mxu1 %v950_v29  ;;  %v979_v29 = vld [vmem:[#allocation10] sm:$0xff]  }
  0x8b   :  { %426 = vmatprep.subr.bf16.mxu1 %v951_v30  ;;  %v980_v30 = vld [vmem:[#allocation10 + $0x8] sm:$0xff]  }
  0x8e   :  { %427 = vmatpush1.bf16.msra.mxu1 %v953_v31  ;;  %v981_v31 = vld [vmem:[#allocation10 + $0x10] sm:$0xff]  }
  0x8f   :  { %428 = vmatprep.subr.bf16.mxu1 %v954_v32  ;;  %v982_v32 = vld [vmem:[#allocation10 + $0x18] sm:$0xff]  }
  0x92   :  { %429 = vmatpush1.bf16.msra.mxu1 %v956_v33  ;;  %v983_v33 = vld [vmem:[#allocation10 + $0x20] sm:$0xff]  }
  0x93   :  { %430 = vmatprep.subr.bf16.mxu1 %v957_v34  ;;  %v984_v34 = vld [vmem:[#allocation10 + $0x28] sm:$0xff]  }
  0x96   :  { %431 = vmatpush1.bf16.msra.mxu1 %v959_v35  ;;  %v985_v35 = vld [vmem:[#allocation10 + $0x30] sm:$0xff]  }
  0x97   :  { %432 = vmatprep.subr.bf16.mxu1 %v960_v36  ;;  %v986_v36 = vld [vmem:[#allocation10 + $0x38] sm:$0xff]  }
  0x9a   :  { %433 = vmatpush1.bf16.msra.mxu1 %v962_v37 }
 0x136   :  { %v183_v56 = vpop.f32.mrb[0].mxu0 }
 0x137   :  { %v184_v57 = vadd.f32 %v183_v56, %v113_v54  ;;  %v185_v58 = vpop.f32.mrb[1].mxu0 }
 0x138   :  { %v186_v59 = vadd.f32 %v185_v58, %v117_v55  ;;  %v187_v60 = vpop.f32.mrb[2].mxu0 }
 0x139   :  { %v188_v61 = vadd.f32 %v187_v60, %v113_v54  ;;  %v189_v62 = vpop.f32.mrb[3].mxu0  ;;  %v192_v0 = vmax.f32 %v184_v57, 0.0 }
 0x13a   :  { %v190_v63 = vadd.f32 %v189_v62, %v117_v55  ;;  %v193_v2 = vmax.f32 %v186_v59, 0.0 }
 0x13b   :  { %v194_v1 = vmax.f32 %v188_v61, 0.0 }
 0x13c   :  { %v195_v3 = vmax.f32 %v190_v63, 0.0 }
 0x13d   :  { %v196_v4 = vpack.c.bf16 %v194_v1, %v192_v0 }
 0x13e   :  { %v197_v5 = vpack.c.bf16 %v195_v3, %v193_v2 }
 0x140   :  { %434 = vmatprep.mubr.bf16.mxu1 %v197_v5 }
 0x141   :  { %435 = vmatmul.mubr.bf16.vlgmr.msra.gmra.mrb[0].mxu1 %v196_v4 }
 0x214   :  { %v436_v15 = vpop.f32.mrb[0].mxu1 }
 0x215   :  { %v437_v16 = vadd.f32 %v436_v15, %v235_v13  ;;  %v438_v17 = vpop.f32.mrb[1].mxu1 }
 0x216   :  { %v439_v18 = vadd.f32 %v438_v17, %v239_v14  ;;  %v440_v19 = vpop.f32.mrb[2].mxu1 }
 0x217   :  { %v441_v20 = vadd.f32 %v440_v19, %v235_v13  ;;  %v442_v21 = vpop.f32.mrb[3].mxu1  ;;  %v445_v23 = vmax.f32 %v437_v16, 0.0 }
 0x218   :  { %v443_v22 = vadd.f32 %v442_v21, %v239_v14  ;;  %v446_v25 = vmax.f32 %v439_v18, 0.0 }
 0x219   :  { %v447_v24 = vmax.f32 %v441_v20, 0.0 }
 0x21a   :  { %v448_v26 = vmax.f32 %v443_v22, 0.0 }
 0x21b   :  { %v449_v27 = vpack.c.bf16 %v447_v24, %v445_v23 }
 0x21c   :  { %v450_v28 = vpack.c.bf16 %v448_v26, %v446_v25 }
 0x21e   :  { %618 = vmatprep.mubr.bf16.mxu0 %v450_v28 }
 0x21f   :  { %619 = vmatmul.mubr.bf16.vlgmr.msra.gmra.mrb[4].mxu0 %v449_v27 }
 0x220   :  { %876 = vmatpush3.bf16.msra.mxu0 %v979_v29  ;;  %891 = vmatprep.mubr.msk.bf16.mxu0 %vm1138_vm1, %v1137_v11 }
 0x221   :  { %877 = vmatprep.subr.bf16.mxu0 %v1137_v11 }
 0x224   :  { %878 = vmatpush3.bf16.msra.mxu0 %v980_v30 }
 0x225   :  { %879 = vmatprep.subr.bf16.mxu0 %v1137_v11 }
 0x228   :  { %880 = vmatpush3.bf16.msra.mxu0 %v981_v31 }
 0x229   :  { %881 = vmatprep.subr.bf16.mxu0 %v1137_v11 }
 0x22c   :  { %882 = vmatpush3.bf16.msra.mxu0 %v982_v32 }
 0x22d   :  { %883 = vmatprep.subr.bf16.mxu0 %v1137_v11 }
 0x230   :  { %884 = vmatpush3.bf16.msra.mxu0 %v983_v33 }
 0x231   :  { %885 = vmatprep.subr.bf16.mxu0 %v1137_v11 }
 0x234   :  { %886 = vmatpush3.bf16.msra.mxu0 %v984_v34 }
 0x235   :  { %887 = vmatprep.subr.bf16.mxu0 %v1137_v11 }
 0x238   :  { %888 = vmatpush3.bf16.msra.mxu0 %v985_v35 }
 0x239   :  { %889 = vmatprep.subr.bf16.mxu0 %v1137_v11 }
 0x23c   :  { %890 = vmatpush3.bf16.msra.mxu0 %v986_v36 }
 0x2f2   :  { %v860_v37 = vpop.f32.mrb[4].mxu0 }
 0x2f3   :  { %v861_v39 = vpop.f32.mrb[5].mxu0 }
 0x2f4   :  { %v862_v40 = vadd.f32 %v861_v39, %v860_v37  ;;  %v863_v41 = vpop.f32.mrb[6].mxu0 }
 0x2f5   :  { %v864_v42 = vpop.f32.mrb[7].mxu0 }
 0x2f6   :  { %v621_v43 = vadd.f32 %v862_v40, %v809_v38  ;;  %v865_v44 = vadd.f32 %v864_v42, %v863_v41 }
 0x2f8   :  { %v624_v45 = vadd.f32 %v865_v44, %v809_v38  ;;  %v627_v46 = vmax.f32 %v621_v43, 0.0 }
 0x2fa   :  { %v628_v47 = vmax.f32 %v624_v45, 0.0 }
 0x2fc   :  { %v629_v48 = vpack.c.bf16 %v628_v47, %v627_v46 }
 0x2fe   :  { %892 = vmatmul.mubr.bf16.vlgmr.msra.gmra.mrb[8].mxu0 %v629_v48 }
 0x3d1   :  { %v735_v50 = vpop.f32.mrb[8].mxu0 }
 0x3d2   :  { %v893_v51 = vpop.f32.mrb[9].mxu0  ;;  %v736_v53 = vadd.f32 %v826_v49, %v735_v50 }
 0x3d3   :  { %v738_v52 = vpop.f32.mrb[10].mxu0 }
 0x3d4   :  { %v739_v54 = vadd.f32 %v826_v49, %v738_v52  ;;  %v894_v55 = vpop.f32.mrb[11].mxu0 }
 0x3d6   :  { %v842_v56 = vpack.c.bf16 %v739_v54, %v736_v53 }
 0x3d8   :  { %843 = vst [vmem:[#allocation11] sm:$0xff] %v842_v56  }
 0x3d9   :  { %1108 = shalt.err (!%p1105_p2)
}
 0x3da   :  { %s1109_s18 = scalar_lea.hbm %s1301_s9, 128 }
 0x3db   :  { %p1110_p3 = scmp.ne.s32.totalorder %s1301_s9, %s1109_s18  ;;  %p1113_p4 = scmp.lt.u32.totalorder %s1109_s18, %s1301_s9 }
 0x3dd   :  { %p1115_p5 = pnand %p1113_p4, %p1110_p3 }
 0x3df   :  { %1118 = shalt.err (!%p1115_p5)
}
 0x3e0   :  { %763 = dma.vmem_to_hbm [thread:$0]  %s758_s6, 128, %s1301_s9, [#allocation4], %s1132_s10, %s1132_s10, %s1133_s14  }
 0x3e1   :  { %1125 = dma.done.wait [#allocation4], 128  }
 0x3e2   :  { %1126 = vsyncadd [#allocation4], 4294967168 }
 0x3e3   :  { %767 = vsyncpa [#allocation3], 1 }
 0x3e4   :  { %768 = vsyncpa [#allocation6], 1 }
 0x3e5   :  { %769 = vsyncpa [#allocation9], 1 }
 0x3e6   :  { %770 = vsyncpa [#allocation4], 1 }

</bundles_post_ra>
